<compile_context>
chip_gen: v7x
topology: tpu7x:2x2x1
jax: 0.10.0
libtpu: 0.0.40
codegen_flags: <defaults>
</compile_context>

<pallas_src>
import functools

import jax
import jax.numpy as jnp
from jax import lax
from jax.experimental import pallas as pl
from jax.experimental.pallas import tpu as pltpu


def _meso_attn_kernel(x_ref, w_in_ref, b_in_ref, wo_ref, bo_ref,
                      o_ref, w_ref, *, num_heads: int):
    x = x_ref[0]                                # (C, E)
    C, E = x.shape
    dh = E // num_heads
    scale = 1.0 / float(dh) ** 0.5

    # Fused in-projection: qkv = x @ [W_q^T | W_k^T | W_v^T] + [b_q | b_k | b_v]
    qkv = jnp.dot(x, w_in_ref[...],
                  preferred_element_type=jnp.float32) + b_in_ref[...]   # (C, 3E)

    out_acc = jnp.zeros((C, E), dtype=jnp.float32)
    w_acc = jnp.zeros((C, C), dtype=jnp.float32)

    # Static (unrolled) loop over heads; all slices are static.
    for h in range(num_heads):
        lo = h * dh
        qh = qkv[:, lo:lo + dh] * scale                     # (C, dh)
        kh = qkv[:, E + lo:E + lo + dh]                     # (C, dh)
        vh = qkv[:, 2 * E + lo:2 * E + lo + dh]             # (C, dh)

        # scores = qh @ kh^T without materializing a transpose (contract axis 1).
        s = lax.dot_general(qh, kh,
                            dimension_numbers=(((1,), (1,)), ((), ())),
                            preferred_element_type=jnp.float32)   # (C, C)

        # Numerically-stable softmax over the key axis.
        m = jnp.max(s, axis=-1, keepdims=True)
        p = jnp.exp(s - m)
        aw = p / jnp.sum(p, axis=-1, keepdims=True)               # (C, C)
        w_acc = w_acc + aw

        oh = jnp.dot(aw, vh, preferred_element_type=jnp.float32)  # (C, dh)

        # Fold the head-concat into the output projection:
        #   concat_h(o_h) @ W_o^T == sum_h o_h @ (W_o^T rows of head h)
        out_acc = out_acc + jnp.dot(oh, wo_ref[lo:lo + dh, :],
                                    preferred_element_type=jnp.float32)

    o_ref[0] = (out_acc + bo_ref[...]).astype(o_ref.dtype)
    w_ref[0] = (w_acc * (1.0 / num_heads)).astype(w_ref.dtype)


def meso_layer_forward(x, coor, in_proj_weight, in_proj_bias,
                       out_proj_weight, out_proj_bias, num_heads):
    """x: (B, C, E) f32, coor: (C, 2), in_proj_weight: (3E, E), in_proj_bias: (3E,),
    out_proj_weight: (E, E), out_proj_bias: (E,).
    Returns (attn_out, attn_weights, coor_expanded)."""
    B, C, E = x.shape
    assert E % num_heads == 0

    # Wrapper-side glue: transpose/pack the projection params once.
    w_in = in_proj_weight.T                    # (E, 3E) == [W_q^T | W_k^T | W_v^T]
    b_in = in_proj_bias.reshape(1, 3 * E)      # (1, 3E)
    wo = out_proj_weight.T                     # (E, E)
    bo = out_proj_bias.reshape(1, E)           # (1, E)

    kernel = functools.partial(_meso_attn_kernel, num_heads=num_heads)
    full = lambda b: (0, 0)

    attn_out, attn_w = pl.pallas_call(
        kernel,
        out_shape=(jax.ShapeDtypeStruct((B, C, E), jnp.float32),
                   jax.ShapeDtypeStruct((B, C, C), jnp.float32)),
        grid_spec=pltpu.PrefetchScalarGridSpec(
            num_scalar_prefetch=0,
            grid=(B,),
            in_specs=[
                pl.BlockSpec((1, C, E), lambda b: (b, 0, 0)),   # x (one batch row)
                pl.BlockSpec((E, 3 * E), full),                 # packed in-proj weight
                pl.BlockSpec((1, 3 * E), full),                 # packed in-proj bias
                pl.BlockSpec((E, E), full),                     # W_o^T
                pl.BlockSpec((1, E), full),                     # b_o
            ],
            out_specs=[
                pl.BlockSpec((1, C, E), lambda b: (b, 0, 0)),   # attn_output
                pl.BlockSpec((1, C, C), lambda b: (b, 0, 0)),   # attn_weights (head-avg)
            ],
        ),
        compiler_params=pltpu.CompilerParams(
            dimension_semantics=("parallel",)),                 # 2-TC sharding on v7x
    )(x, w_in, b_in, wo, bo)

    # coor.unsqueeze(0).repeat(B,1,1) — pure broadcast, no kernel needed.
    coor_expanded = jnp.broadcast_to(coor[None, :, :], (B, C, coor.shape[-1]))
    return attn_out, attn_w, coor_expanded


def _meso_reference(x, in_w, in_b, out_w, out_b, num_heads):
    """Pure-JAX reference mirroring nn.MultiheadAttention self-attention."""
    B, C, E = x.shape
    dh = E // num_heads
    q = x @ in_w[0:E].T + in_b[0:E]
    k = x @ in_w[E:2 * E].T + in_b[E:2 * E]
    v = x @ in_w[2 * E:3 * E].T + in_b[2 * E:3 * E]
    split = lambda t: t.reshape(B, C, num_heads, dh).transpose(0, 2, 1, 3)
    qh, kh, vh = split(q), split(k), split(v)
    s = jnp.einsum('bhqd,bhkd->bhqk', qh, kh) / jnp.sqrt(jnp.float32(dh))
    w = jax.nn.softmax(s, axis=-1)
    o = jnp.einsum('bhqk,bhkd->bhqd', w, vh)
    o = o.transpose(0, 2, 1, 3).reshape(B, C, E) @ out_w.T + out_b
    return o, w.mean(axis=1)


if __name__ == "__main__":
    # Shapes implied by the forward: batch=2, n_channels=4, trainable_vector=32,
    # num_heads=4 (head_dim=8), coordinates are 2-D.
    B, C, E, H = 2, 4, 32, 4

    key = jax.random.PRNGKey(0)
    kx, kc, kw_in, kw_out, kb_out = jax.random.split(key, 5)

    x = jax.random.normal(kx, (B, C, E), dtype=jnp.float32)
    coor = jax.random.normal(kc, (C, 2), dtype=jnp.float32)

    # Deterministic MultiheadAttention params: xavier-uniform in_proj, zero in_proj bias.
    limit_in = jnp.sqrt(6.0 / (E + 3 * E))
    in_proj_weight = jax.random.uniform(kw_in, (3 * E, E), minval=-limit_in,
                                        maxval=limit_in, dtype=jnp.float32)
    in_proj_bias = jnp.zeros((3 * E,), dtype=jnp.float32)
    limit_out = jnp.sqrt(6.0 / (E + E))
    out_proj_weight = jax.random.uniform(kw_out, (E, E), minval=-limit_out,
                                         maxval=limit_out, dtype=jnp.float32)
    out_proj_bias = 0.01 * jax.random.normal(kb_out, (E,), dtype=jnp.float32)

    attn_out, attn_w, coor_exp = meso_layer_forward(
        x, coor, in_proj_weight, in_proj_bias, out_proj_weight, out_proj_bias, H)
    jax.block_until_ready((attn_out, attn_w, coor_exp))

    assert attn_out.shape == (B, C, E)
    assert attn_w.shape == (B, C, C)
    assert coor_exp.shape == (B, C, 2)

    # Tolerance check against a pure-JAX reference.
    ref_out, ref_w = _meso_reference(x, in_proj_weight, in_proj_bias,
                                     out_proj_weight, out_proj_bias, H)
    assert jnp.allclose(attn_out, ref_out, rtol=1e-3, atol=1e-3)
    assert jnp.allclose(attn_w, ref_w, rtol=1e-3, atol=1e-3)
    assert jnp.allclose(coor_exp, jnp.broadcast_to(coor[None], (B, C, 2)))

    print("KERNEL_OK")
</pallas_src>

<mosaic_0001>
module attributes {stable_mosaic.version = 11 : i64} {
  func.func @_meso_attn_kernel(%arg0: i32, %arg1: memref<1x4x32xf32, #tpu.memory_space<vmem>>, %arg2: memref<32x96xf32, #tpu.memory_space<vmem>>, %arg3: memref<1x96xf32, #tpu.memory_space<vmem>>, %arg4: memref<32x32xf32, #tpu.memory_space<vmem>>, %arg5: memref<1x32xf32, #tpu.memory_space<vmem>>, %arg6: memref<1x4x32xf32, #tpu.memory_space<vmem>>, %arg7: memref<1x4x4xf32, #tpu.memory_space<vmem>>) attributes {dimension_semantics = [#tpu.dimension_semantics<parallel>], iteration_bounds = array<i64: 2>, scalar_prefetch = 0 : i64, scratch_operands = 0 : i64, tpu.core_type = #tpu.core_type<tc>, window_params = [{transform_indices = @transform_0, window_bounds = array<i64: 1, 4, 32>}, {pipeline_mode = #tpu.pipeline_mode<synchronous>, transform_indices = @transform_1, window_bounds = array<i64: 32, 96>}, {pipeline_mode = #tpu.pipeline_mode<synchronous>, transform_indices = @transform_2, window_bounds = array<i64: 1, 96>}, {pipeline_mode = #tpu.pipeline_mode<synchronous>, transform_indices = @transform_3, window_bounds = array<i64: 32, 32>}, {pipeline_mode = #tpu.pipeline_mode<synchronous>, transform_indices = @transform_4, window_bounds = array<i64: 1, 32>}, {transform_indices = @transform_5, window_bounds = array<i64: 1, 4, 32>}, {transform_indices = @transform_6, window_bounds = array<i64: 1, 4, 4>}]} {
    %c0 = arith.constant 0 : index
    %c0_0 = arith.constant 0 : index
    %c0_1 = arith.constant 0 : index
    %0 = vector.load %arg1[%c0, %c0_0, %c0_1] : memref<1x4x32xf32, #tpu.memory_space<vmem>>, vector<1x4x32xf32>
    %1 = vector.shape_cast %0 : vector<1x4x32xf32> to vector<4x32xf32>
    %c0_2 = arith.constant 0 : index
    %c0_3 = arith.constant 0 : index
    %2 = vector.load %arg2[%c0_2, %c0_3] : memref<32x96xf32, #tpu.memory_space<vmem>>, vector<32x96xf32>
    %cst = arith.constant dense<0.000000e+00> : vector<4x96xf32>
    %3 = tpu.matmul %1, %2, %cst {dimension_numbers = #tpu.dot_dimension_numbers<[1], [0], [0], [1], [0, 0, 1, 1], [], []>} : vector<4x32xf32>, vector<32x96xf32>, vector<4x96xf32> -> vector<4x96xf32>
    %c0_4 = arith.constant 0 : index
    %c0_5 = arith.constant 0 : index
    %4 = vector.load %arg3[%c0_4, %c0_5] : memref<1x96xf32, #tpu.memory_space<vmem>>, vector<1x96xf32>
    %5 = vector.broadcast %4 : vector<1x96xf32> to vector<4x96xf32>
    %6 = arith.addf %3, %5 : vector<4x96xf32>
    %cst_6 = arith.constant 0.000000e+00 : f32
    %7 = vector.broadcast %cst_6 : f32 to vector<4x32xf32>
    %cst_7 = arith.constant 0.000000e+00 : f32
    %8 = vector.broadcast %cst_7 : f32 to vector<4x4xf32>
    %9 = vector.extract_strided_slice %6 {offsets = [0, 0], sizes = [4, 8], strides = [1, 1]} : vector<4x96xf32> to vector<4x8xf32>
    %cst_8 = arith.constant 0.353553385 : f32
    %10 = vector.broadcast %cst_8 : f32 to vector<4x8xf32>
    %11 = arith.mulf %9, %10 : vector<4x8xf32>
    %12 = vector.extract_strided_slice %6 {offsets = [0, 32], sizes = [4, 8], strides = [1, 1]} : vector<4x96xf32> to vector<4x8xf32>
    %13 = vector.extract_strided_slice %6 {offsets = [0, 64], sizes = [4, 8], strides = [1, 1]} : vector<4x96xf32> to vector<4x8xf32>
    %cst_9 = arith.constant dense<0.000000e+00> : vector<4x4xf32>
    %14 = tpu.matmul %11, %12, %cst_9 {dimension_numbers = #tpu.dot_dimension_numbers<[1], [1], [0], [0], [0, 0, 1, 0], [], []>} : vector<4x8xf32>, vector<4x8xf32>, vector<4x4xf32> -> vector<4x4xf32>
    %cst_10 = arith.constant dense<0xFF800000> : vector<4xf32>
    %15 = vector.multi_reduction <maximumf>, %14, %cst_10 [1] : vector<4x4xf32> to vector<4xf32>
    %16 = vector.shape_cast %15 : vector<4xf32> to vector<4x1xf32>
    %17 = vector.broadcast %16 : vector<4x1xf32> to vector<4x4xf32>
    %18 = arith.subf %14, %17 : vector<4x4xf32>
    %19 = math.exp %18 : vector<4x4xf32>
    %cst_11 = arith.constant dense<0.000000e+00> : vector<4xf32>
    %20 = vector.multi_reduction <add>, %19, %cst_11 [1] : vector<4x4xf32> to vector<4xf32>
    %21 = vector.shape_cast %20 : vector<4xf32> to vector<4x1xf32>
    %22 = vector.broadcast %21 : vector<4x1xf32> to vector<4x4xf32>
    %23 = arith.divf %19, %22 : vector<4x4xf32>
    %24 = arith.addf %8, %23 : vector<4x4xf32>
    %cst_12 = arith.constant dense<0.000000e+00> : vector<4x8xf32>
    %25 = tpu.matmul %23, %13, %cst_12 {dimension_numbers = #tpu.dot_dimension_numbers<[1], [0], [0], [1], [0, 0, 1, 1], [], []>} : vector<4x4xf32>, vector<4x8xf32>, vector<4x8xf32> -> vector<4x8xf32>
    %c0_13 = arith.constant 0 : index
    %c0_14 = arith.constant 0 : index
    %26 = vector.load %arg4[%c0_13, %c0_14] : memref<32x32xf32, #tpu.memory_space<vmem>>, vector<8x32xf32>
    %cst_15 = arith.constant dense<0.000000e+00> : vector<4x32xf32>
    %27 = tpu.matmul %25, %26, %cst_15 {dimension_numbers = #tpu.dot_dimension_numbers<[1], [0], [0], [1], [0, 0, 1, 1], [], []>} : vector<4x8xf32>, vector<8x32xf32>, vector<4x32xf32> -> vector<4x32xf32>
    %28 = arith.addf %7, %27 : vector<4x32xf32>
    %29 = vector.extract_strided_slice %6 {offsets = [0, 8], sizes = [4, 8], strides = [1, 1]} : vector<4x96xf32> to vector<4x8xf32>
    %cst_16 = arith.constant 0.353553385 : f32
    %30 = vector.broadcast %cst_16 : f32 to vector<4x8xf32>
    %31 = arith.mulf %29, %30 : vector<4x8xf32>
    %32 = vector.extract_strided_slice %6 {offsets = [0, 40], sizes = [4, 8], strides = [1, 1]} : vector<4x96xf32> to vector<4x8xf32>
    %33 = vector.extract_strided_slice %6 {offsets = [0, 72], sizes = [4, 8], strides = [1, 1]} : vector<4x96xf32> to vector<4x8xf32>
    %cst_17 = arith.constant dense<0.000000e+00> : vector<4x4xf32>
    %34 = tpu.matmul %31, %32, %cst_17 {dimension_numbers = #tpu.dot_dimension_numbers<[1], [1], [0], [0], [0, 0, 1, 0], [], []>} : vector<4x8xf32>, vector<4x8xf32>, vector<4x4xf32> -> vector<4x4xf32>
    %cst_18 = arith.constant dense<0xFF800000> : vector<4xf32>
    %35 = vector.multi_reduction <maximumf>, %34, %cst_18 [1] : vector<4x4xf32> to vector<4xf32>
    %36 = vector.shape_cast %35 : vector<4xf32> to vector<4x1xf32>
    %37 = vector.broadcast %36 : vector<4x1xf32> to vector<4x4xf32>
    %38 = arith.subf %34, %37 : vector<4x4xf32>
    %39 = math.exp %38 : vector<4x4xf32>
    %cst_19 = arith.constant dense<0.000000e+00> : vector<4xf32>
    %40 = vector.multi_reduction <add>, %39, %cst_19 [1] : vector<4x4xf32> to vector<4xf32>
    %41 = vector.shape_cast %40 : vector<4xf32> to vector<4x1xf32>
    %42 = vector.broadcast %41 : vector<4x1xf32> to vector<4x4xf32>
    %43 = arith.divf %39, %42 : vector<4x4xf32>
    %44 = arith.addf %24, %43 : vector<4x4xf32>
    %cst_20 = arith.constant dense<0.000000e+00> : vector<4x8xf32>
    %45 = tpu.matmul %43, %33, %cst_20 {dimension_numbers = #tpu.dot_dimension_numbers<[1], [0], [0], [1], [0, 0, 1, 1], [], []>} : vector<4x4xf32>, vector<4x8xf32>, vector<4x8xf32> -> vector<4x8xf32>
    %c8 = arith.constant 8 : index
    %c0_21 = arith.constant 0 : index
    %46 = vector.load %arg4[%c8, %c0_21] : memref<32x32xf32, #tpu.memory_space<vmem>>, vector<8x32xf32>
    %cst_22 = arith.constant dense<0.000000e+00> : vector<4x32xf32>
    %47 = tpu.matmul %45, %46, %cst_22 {dimension_numbers = #tpu.dot_dimension_numbers<[1], [0], [0], [1], [0, 0, 1, 1], [], []>} : vector<4x8xf32>, vector<8x32xf32>, vector<4x32xf32> -> vector<4x32xf32>
    %48 = arith.addf %28, %47 : vector<4x32xf32>
    %49 = vector.extract_strided_slice %6 {offsets = [0, 16], sizes = [4, 8], strides = [1, 1]} : vector<4x96xf32> to vector<4x8xf32>
    %cst_23 = arith.constant 0.353553385 : f32
    %50 = vector.broadcast %cst_23 : f32 to vector<4x8xf32>
    %51 = arith.mulf %49, %50 : vector<4x8xf32>
    %52 = vector.extract_strided_slice %6 {offsets = [0, 48], sizes = [4, 8], strides = [1, 1]} : vector<4x96xf32> to vector<4x8xf32>
    %53 = vector.extract_strided_slice %6 {offsets = [0, 80], sizes = [4, 8], strides = [1, 1]} : vector<4x96xf32> to vector<4x8xf32>
    %cst_24 = arith.constant dense<0.000000e+00> : vector<4x4xf32>
    %54 = tpu.matmul %51, %52, %cst_24 {dimension_numbers = #tpu.dot_dimension_numbers<[1], [1], [0], [0], [0, 0, 1, 0], [], []>} : vector<4x8xf32>, vector<4x8xf32>, vector<4x4xf32> -> vector<4x4xf32>
    %cst_25 = arith.constant dense<0xFF800000> : vector<4xf32>
    %55 = vector.multi_reduction <maximumf>, %54, %cst_25 [1] : vector<4x4xf32> to vector<4xf32>
    %56 = vector.shape_cast %55 : vector<4xf32> to vector<4x1xf32>
    %57 = vector.broadcast %56 : vector<4x1xf32> to vector<4x4xf32>
    %58 = arith.subf %54, %57 : vector<4x4xf32>
    %59 = math.exp %58 : vector<4x4xf32>
    %cst_26 = arith.constant dense<0.000000e+00> : vector<4xf32>
    %60 = vector.multi_reduction <add>, %59, %cst_26 [1] : vector<4x4xf32> to vector<4xf32>
    %61 = vector.shape_cast %60 : vector<4xf32> to vector<4x1xf32>
    %62 = vector.broadcast %61 : vector<4x1xf32> to vector<4x4xf32>
    %63 = arith.divf %59, %62 : vector<4x4xf32>
    %64 = arith.addf %44, %63 : vector<4x4xf32>
    %cst_27 = arith.constant dense<0.000000e+00> : vector<4x8xf32>
    %65 = tpu.matmul %63, %53, %cst_27 {dimension_numbers = #tpu.dot_dimension_numbers<[1], [0], [0], [1], [0, 0, 1, 1], [], []>} : vector<4x4xf32>, vector<4x8xf32>, vector<4x8xf32> -> vector<4x8xf32>
    %c16 = arith.constant 16 : index
    %c0_28 = arith.constant 0 : index
    %66 = vector.load %arg4[%c16, %c0_28] : memref<32x32xf32, #tpu.memory_space<vmem>>, vector<8x32xf32>
    %cst_29 = arith.constant dense<0.000000e+00> : vector<4x32xf32>
    %67 = tpu.matmul %65, %66, %cst_29 {dimension_numbers = #tpu.dot_dimension_numbers<[1], [0], [0], [1], [0, 0, 1, 1], [], []>} : vector<4x8xf32>, vector<8x32xf32>, vector<4x32xf32> -> vector<4x32xf32>
    %68 = arith.addf %48, %67 : vector<4x32xf32>
    %69 = vector.extract_strided_slice %6 {offsets = [0, 24], sizes = [4, 8], strides = [1, 1]} : vector<4x96xf32> to vector<4x8xf32>
    %cst_30 = arith.constant 0.353553385 : f32
    %70 = vector.broadcast %cst_30 : f32 to vector<4x8xf32>
    %71 = arith.mulf %69, %70 : vector<4x8xf32>
    %72 = vector.extract_strided_slice %6 {offsets = [0, 56], sizes = [4, 8], strides = [1, 1]} : vector<4x96xf32> to vector<4x8xf32>
    %73 = vector.extract_strided_slice %6 {offsets = [0, 88], sizes = [4, 8], strides = [1, 1]} : vector<4x96xf32> to vector<4x8xf32>
    %cst_31 = arith.constant dense<0.000000e+00> : vector<4x4xf32>
    %74 = tpu.matmul %71, %72, %cst_31 {dimension_numbers = #tpu.dot_dimension_numbers<[1], [1], [0], [0], [0, 0, 1, 0], [], []>} : vector<4x8xf32>, vector<4x8xf32>, vector<4x4xf32> -> vector<4x4xf32>
    %cst_32 = arith.constant dense<0xFF800000> : vector<4xf32>
    %75 = vector.multi_reduction <maximumf>, %74, %cst_32 [1] : vector<4x4xf32> to vector<4xf32>
    %76 = vector.shape_cast %75 : vector<4xf32> to vector<4x1xf32>
    %77 = vector.broadcast %76 : vector<4x1xf32> to vector<4x4xf32>
    %78 = arith.subf %74, %77 : vector<4x4xf32>
    %79 = math.exp %78 : vector<4x4xf32>
    %cst_33 = arith.constant dense<0.000000e+00> : vector<4xf32>
    %80 = vector.multi_reduction <add>, %79, %cst_33 [1] : vector<4x4xf32> to vector<4xf32>
    %81 = vector.shape_cast %80 : vector<4xf32> to vector<4x1xf32>
    %82 = vector.broadcast %81 : vector<4x1xf32> to vector<4x4xf32>
    %83 = arith.divf %79, %82 : vector<4x4xf32>
    %84 = arith.addf %64, %83 : vector<4x4xf32>
    %cst_34 = arith.constant dense<0.000000e+00> : vector<4x8xf32>
    %85 = tpu.matmul %83, %73, %cst_34 {dimension_numbers = #tpu.dot_dimension_numbers<[1], [0], [0], [1], [0, 0, 1, 1], [], []>} : vector<4x4xf32>, vector<4x8xf32>, vector<4x8xf32> -> vector<4x8xf32>
    %c24 = arith.constant 24 : index
    %c0_35 = arith.constant 0 : index
    %86 = vector.load %arg4[%c24, %c0_35] : memref<32x32xf32, #tpu.memory_space<vmem>>, vector<8x32xf32>
    %cst_36 = arith.constant dense<0.000000e+00> : vector<4x32xf32>
    %87 = tpu.matmul %85, %86, %cst_36 {dimension_numbers = #tpu.dot_dimension_numbers<[1], [0], [0], [1], [0, 0, 1, 1], [], []>} : vector<4x8xf32>, vector<8x32xf32>, vector<4x32xf32> -> vector<4x32xf32>
    %88 = arith.addf %68, %87 : vector<4x32xf32>
    %c0_37 = arith.constant 0 : index
    %c0_38 = arith.constant 0 : index
    %89 = vector.load %arg5[%c0_37, %c0_38] : memref<1x32xf32, #tpu.memory_space<vmem>>, vector<1x32xf32>
    %90 = vector.broadcast %89 : vector<1x32xf32> to vector<4x32xf32>
    %91 = arith.addf %88, %90 : vector<4x32xf32>
    %c0_39 = arith.constant 0 : index
    %c0_40 = arith.constant 0 : index
    %c0_41 = arith.constant 0 : index
    %92 = vector.load %arg6[%c0_39, %c0_40, %c0_41] : memref<1x4x32xf32, #tpu.memory_space<vmem>>, vector<1x4x32xf32>
    %93 = vector.shape_cast %92 : vector<1x4x32xf32> to vector<4x32xf32>
    %94 = vector.shape_cast %91 : vector<4x32xf32> to vector<1x4x32xf32>
    tpu.vector_store %arg6[%c0_39, %c0_40, %c0_41], %94 {strides = array<i32>} : memref<1x4x32xf32, #tpu.memory_space<vmem>>, vector<1x4x32xf32>,
    %cst_42 = arith.constant 2.500000e-01 : f32
    %95 = vector.broadcast %cst_42 : f32 to vector<4x4xf32>
    %96 = arith.mulf %84, %95 : vector<4x4xf32>
    %c0_43 = arith.constant 0 : index
    %c0_44 = arith.constant 0 : index
    %c0_45 = arith.constant 0 : index
    %97 = vector.load %arg7[%c0_43, %c0_44, %c0_45] : memref<1x4x4xf32, #tpu.memory_space<vmem>>, vector<1x4x4xf32>
    %98 = vector.shape_cast %97 : vector<1x4x4xf32> to vector<4x4xf32>
    %99 = vector.shape_cast %96 : vector<4x4xf32> to vector<1x4x4xf32>
    tpu.vector_store %arg7[%c0_43, %c0_44, %c0_45], %99 {strides = array<i32>} : memref<1x4x4xf32, #tpu.memory_space<vmem>>, vector<1x4x4xf32>,
    return
  }
  func.func @transform_0(%arg0: i32) -> (i32, i32, i32) {
    %c0_i32 = arith.constant 0 : i32
    %c0_i32_0 = arith.constant 0 : i32
    %c0_i32_1 = arith.constant 0 : i32
    return %arg0, %c0_i32, %c0_i32_0 : i32, i32, i32
  }
  func.func @transform_1(%arg0: i32) -> (i32, i32) {
    %c0_i32 = arith.constant 0 : i32
    %c0_i32_0 = arith.constant 0 : i32
    %c0_i32_1 = arith.constant 0 : i32
    return %c0_i32, %c0_i32_0 : i32, i32
  }
  func.func @transform_2(%arg0: i32) -> (i32, i32) {
    %c0_i32 = arith.constant 0 : i32
    %c0_i32_0 = arith.constant 0 : i32
    %c0_i32_1 = arith.constant 0 : i32
    return %c0_i32, %c0_i32_0 : i32, i32
  }
  func.func @transform_3(%arg0: i32) -> (i32, i32) {
    %c0_i32 = arith.constant 0 : i32
    %c0_i32_0 = arith.constant 0 : i32
    %c0_i32_1 = arith.constant 0 : i32
    return %c0_i32, %c0_i32_0 : i32, i32
  }
  func.func @transform_4(%arg0: i32) -> (i32, i32) {
    %c0_i32 = arith.constant 0 : i32
    %c0_i32_0 = arith.constant 0 : i32
    %c0_i32_1 = arith.constant 0 : i32
    return %c0_i32, %c0_i32_0 : i32, i32
  }
  func.func @transform_5(%arg0: i32) -> (i32, i32, i32) {
    %c0_i32 = arith.constant 0 : i32
    %c0_i32_0 = arith.constant 0 : i32
    %c0_i32_1 = arith.constant 0 : i32
    return %arg0, %c0_i32, %c0_i32_0 : i32, i32, i32
  }
  func.func @transform_6(%arg0: i32) -> (i32, i32, i32) {
    %c0_i32 = arith.constant 0 : i32
    %c0_i32_0 = arith.constant 0 : i32
    %c0_i32_1 = arith.constant 0 : i32
    return %arg0, %c0_i32, %c0_i32_0 : i32, i32, i32
  }
}

</mosaic_0001>

<bundles_post_ra>
// kernel: tpu_custom_call.1
= control target key start
LH: loop header
LB: loop body
LE: loop exit
PB: predicated region body
PF: predicated region fallthrough
CT: control target
= control target key end

     0   :  { %12 = vsyncpa [#allocation3], 0  ;;  %s2378_s0 = inlined_call_operand.hbm [shape: f32[2,4,32], index: 0, kind: input, shape index: {}]   ;;  %s2379_s1 = inlined_call_operand.hbm [shape: f32[32,96], index: 1, kind: input, shape index: {}]   ;;  %s2380_s2 = inlined_call_operand.vmem [shape: f32[1,96], index: 2, kind: input, shape index: {}]   ;;  %s2381_s3 = inlined_call_operand.hbm [shape: f32[32,32], index: 3, kind: input, shape index: {}]   ;;  %s2382_s4 = inlined_call_operand.vmem [shape: f32[1,32], index: 4, kind: input, shape index: {}]   ;;  %s2383_s5 = inlined_call_operand.hbm [shape: f32[2,4,32], index: 5, kind: output, shape index: {0}]   ;;  %s2384_s6 = inlined_call_operand.hbm [shape: f32[2,4,4], index: 6, kind: output, shape index: {1}]  }
   0x1   :  { %14 = vsyncpa [#allocation3 + $0x1], 0 }
   0x2   :  { %15 = vsyncpa [#allocation6], 0 }
   0x3   :  { %16 = vsyncpa [#allocation4], 0 }
   0x4   :  { %18 = vsyncpa [#allocation4 + $0x1], 0 }
   0x5   :  { %19 = vsyncpa [#allocation10], 0 }
   0x6   :  { %21 = vsyncpa [#allocation10 + $0x1], 0  ;;  %s2027_s21 = smov 0   ;;  %s2029_s22 = smov 0  }
   0x7   :  { %s2031_s23 = smov 0   ;;  %s2033_s24 = smov 0  }
   0x8 LB: > { %s2048_s25 = sadd.s32 4294967295, %s1969_s24   ;;  %s1529_s26 = sadd.s32 4294967294, %s1969_s24   ;;  %s1969_s24 = sphi %s2033_s24, %s2404_s24   ;;  %s1965_s23 = sphi %s2031_s23, %s2403_s23   ;;  %s1961_s22 = sphi %s2029_s22, %s2402_s22   ;;  %s1957_s21 = sphi %s2027_s21, %s2401_s21  }
   0x9   : > { %p47_p0 = scmp.ne.s32.totalorder %s1961_s22, %s1957_s21  ;;  %p2385_p1 = scmp.eq.s32.totalorder %s2048_s25, 0 }
   0xa   : > { %p161_p3 = scmp.eq.s32.totalorder %s1529_s26, 1  ;;  %p1530_p5 = scmp.ge.s32.totalorder %s1969_s24, 1 }
   0xb   : > { %p2057_p4 = por %p2385_p1, %p47_p0  ;;  %p194_p7 = scmp.lt.s32.totalorder %s1969_s24, 3 }
   0xc   : > { %p2062_p6 = por %p161_p3, %p47_p0  ;;  %s1971_s30 = smov [#allocation5]  }
   0xd   : > { %s2388_s27 = scalar_select %p2057_p4, 1, 0 }
   0xe   : > { %s2389_s28 = scalar_select %p2062_p6, 1, 0 }
   0xf   : > { %p2067_p8 = pnand %p1530_p5, %p194_p7  ;;  %s206_s7 = sshll.u32 %s1971_s30, 4  ;;  %s2071_s7 = int_to_ptr.vmem [resolvable:$true] %s206_s7 }
  0x10   : > { %s1972_s9 = smov [#allocation7]   ;;  %s1781_s13 = scalar_lea.hbm %s2379_s1, 512 }
  0x11   : > { %p1691_p9 = pneg %p2067_p8  ;;  %s222_s10 = sshll.u32 %s1972_s9, 4  ;;  %s2082_s10 = int_to_ptr.vmem [resolvable:$true] %s222_s10 }
  0x12   : > { %p1782_p12 = scmp.ne.s32.totalorder %s2379_s1, %s1781_s13  ;;  %p1788_p5 = scmp.lt.u32.totalorder %s1781_s13, %s2379_s1 }
  0x13   : > { %p2078_p11 = pnand %p1691_p9, %p2385_p1 }
  0x15   : > { %p1783_p13 = pneg %p2078_p11 }
  0x17   : > { %p1784_p0 = pnand %p1783_p13, %p1782_p12 }
  0x19   : > { %p1785_p3 = pneg %p1784_p0 }
  0x1b   : > { %p1790_p7 = pnand %p1788_p5, %p1785_p3 }
  0x1d   : > { %1793 = shalt.err (!%p1790_p7)
}
  0x1e   : > { %s1794_s18 = scalar_lea.vmem %s2071_s7, 512  ;;  %p1802_p2 = scmp.lt.s32.totalorder %s2071_s7, %s2071_s7 }
  0x1f   : > { %p1795_p9 = scmp.ne.s32.totalorder %s2071_s7, %s1794_s18  ;;  %p1803_p12 = scmp.lt.s32.totalorder %s1794_s18, %s1794_s18 }
  0x21   : > { %p1797_p10 = pnand %p1795_p9, %p1783_p13  ;;  %p1804_p0 = por %p1803_p12, %p1802_p2 }
  0x23   : > { %p1798_p1 = pneg %p1797_p10 }
  0x25   : > { %p1805_p6 = pnand %p1804_p0, %p1798_p1 }
  0x27   : > { %1808 = shalt.err (!%p1805_p6)
}
  0x28   : > { %s1973_s19 = smov 128   ;;  %s1974_s20 = smov 8  }
  0x29   : > { %1694 = dma.hbm_to_vmem [thread:$0]  (!%p2078_p11), %s2379_s1, 512, %s2071_s7, [#allocation6], %s1973_s19, %s1973_s19, %s1974_s20  }
  0x2a   : > { %s1809_s12 = scalar_lea.hbm %s2381_s3, 512 }
  0x2b   : > { %p1810_p2 = scmp.ne.s32.totalorder %s2381_s3, %s1809_s12  ;;  %p1816_p10 = scmp.lt.u32.totalorder %s1809_s12, %s2381_s3 }
  0x2d   : > { %p1812_p1 = pnand %p1810_p2, %p1783_p13 }
  0x2f   : > { %p1813_p6 = pneg %p1812_p1 }
  0x31   : > { %p1818_p3 = pnand %p1816_p10, %p1813_p6 }
  0x33   : > { %1821 = shalt.err (!%p1818_p3)
}
  0x34   : > { %s1822_s7 = scalar_lea.vmem %s2082_s10, 512  ;;  %p1830_p12 = scmp.lt.s32.totalorder %s2082_s10, %s2082_s10 }
  0x35   : > { %p1823_p5 = scmp.ne.s32.totalorder %s2082_s10, %s1822_s7  ;;  %p1831_p0 = scmp.lt.s32.totalorder %s1822_s7, %s1822_s7 }
  0x37   : > { %p1825_p7 = pnand %p1823_p5, %p1783_p13  ;;  %p1832_p2 = por %p1831_p0, %p1830_p12 }
  0x39   : > { %p1826_p9 = pneg %p1825_p7 }
  0x3b   : > { %p1833_p1 = pnand %p1832_p2, %p1826_p9 }
  0x3d   : > { %1836 = shalt.err (!%p1833_p1)
}
  0x3e   : > { %1697 = dma.hbm_to_vmem [thread:$0]  (!%p2078_p11), %s2381_s3, 512, %s2082_s10, [#allocation6], %s1973_s19, %s1973_s19, %s1974_s20  }
  0x3f   : > { %s2137_s26 = sadd.s32 1, %s1969_s24   ;;  %s34_s8 = sadd.s32 1, %s1965_s23 }
  0x40   : > { %s31_s30 = ssub.s32 %s1969_s24, %s2137_s26  ;;  %p41_p13 = scmp.ne.s32.totalorder %s1965_s23, %s1961_s22 }
  0x41   : > { %p32_p6 = scmp.eq.s32.totalorder %s31_s30, 0  ;;  %p42_p10 = scmp.eq.s32.totalorder %s1969_s24, 0 }
  0x42   : > { %p2392_p3 = scmp.eq.s32.totalorder %s2048_s25, 1  ;;  %p1711_p7 = scmp.lt.s32.totalorder %s1969_s24, 2 }
  0x43   : > { %s2153_s11 = scalar_select %p32_p6, %s1965_s23, %s34_s8  }
  0x44   : > { %p2147_p5 = por %p2392_p3, %p41_p13  ;;  %p43_p9 = por %p42_p10, %p41_p13 }
  0x45   : > { %s239_s12 = sand.u32 1, %s1965_s23   ;;  %s1535_s10 = sshll.u32 %s1969_s24, 6 }
  0x46   : > { %s2393_s9 = scalar_select %p2147_p5, 1, 0 }
  0x47   : > { %s1534_s13 = sshll.u32 %s239_s12, 2  ;;  %s2160_s14 = scalar_lea.hbm %s2378_s0, %s1535_s10 }
  0x48   : > { %s243_s15 = scalar_lea.vmem [#allocation2], %s1534_s13  ;;  %p2164_p11 = pnand %p1711_p7, %p43_p9 }
  0x49   : > { %s250_s16 = sshll.u32 %s243_s15, 4  ;;  %s240_s17 = scalar_lea.sflag [#allocation3], %s239_s12  ;;  %s2162_s16 = int_to_ptr.vmem [resolvable:$true] %s250_s16 }
  0x4a   : > { %s1837_s18 = scalar_lea.hbm %s2160_s14, 64  ;;  %p1839_p0 = pneg %p2164_p11 }
  0x4b   : > { %p1838_p12 = scmp.ne.s32.totalorder %s2160_s14, %s1837_s18  ;;  %s1842_s13 = scalar_lea.hbm %s2378_s0, 128 }
  0x4c   : > { %p1843_p13 = scmp.lt.u32.totalorder %s2160_s14, %s2378_s0  ;;  %p1844_p6 = scmp.lt.u32.totalorder %s1842_s13, %s1837_s18 }
  0x4d   : > { %p1840_p2 = pnand %p1839_p0, %p1838_p12  ;;  %p1846_p3 = scmp.lt.u32.totalorder %s1837_s18, %s2160_s14 }
  0x4e   : > { %p1845_p10 = por %p1844_p6, %p1843_p13 }
  0x4f   : > { %p1841_p1 = pneg %p1840_p2 }
  0x50   : > { %p1847_p7 = por %p1846_p3, %p1845_p10 }
  0x52   : > { %p1848_p9 = pnand %p1847_p7, %p1841_p1 }
  0x54   : > { %1851 = shalt.err (!%p1848_p9)
}
  0x55   : > { %s1852_s12 = scalar_lea.vmem %s2162_s16, 64  ;;  %s1975_s20 = smov [#allocation2]  }
  0x56   : > { %p1853_p12 = scmp.ne.s32.totalorder %s2162_s16, %s1852_s12  ;;  %s1857_s15 = sshll.u32 %s1975_s20, 4  ;;  %s1858_s15 = int_to_ptr.vmem [resolvable:$false] %s1857_s15 }
  0x57   : > { %s1859_s8 = scalar_lea.vmem %s1858_s15, 128  ;;  %p1860_p4 = scmp.lt.s32.totalorder %s2162_s16, %s1858_s15 }
  0x58   : > { %p1855_p2 = pnand %p1853_p12, %p1839_p0  ;;  %p1861_p13 = scmp.lt.s32.totalorder %s1859_s8, %s1852_s12 }
  0x5a   : > { %p1856_p5 = pneg %p1855_p2  ;;  %p1862_p6 = por %p1861_p13, %p1860_p4 }
  0x5c   : > { %p1863_p10 = pnand %p1862_p6, %p1856_p5 }
  0x5e   : > { %1866 = shalt.err (!%p1863_p10)
}
  0x5f   : > { %1701 = dma.hbm_to_vmem [thread:$0]  (!%p2164_p11), %s2160_s14, 64, %s2162_s16, %s240_s17  }
  0x60   : > { %259 = sbr.rel (%p2067_p8) target bundleno = 2693 (0xa85), region = 40  ;;  %s2196_s18 = sand.u32 (!%p2067_p8), 1, %s1961_s22  }
  0x61   : > { %s2199_s30 = sshll.u32 (!%p2067_p8), %s2196_s18, 2  ;;  %s262_s13 = scalar_lea.sflag (!%p2067_p8), [#allocation3], %s2196_s18 }
  0x62   : > { %s265_s10 = scalar_lea.vmem (!%p2067_p8), [#allocation2], %s2199_s30  ;;  %p2395_p4 = scmp.ne.s32.totalorder (!%p2067_p8), %s2388_s27, 0 }
  0x67   : > { %1940 = dma.done.wait (%p2395_p4), %s262_s13, 64  }
  0x68   : > { %1942 = vsyncadd (%p2395_p4), %s262_s13, 4294967232  ;;  %p2396_p5 = scmp.eq.s32.totalorder %s2048_s25, 0 }
  0x6a   : > { %1944 = dma.done.wait (%p2396_p5), [#allocation6], 1024   ;;  %p2397_p8 = pmov %p2396_p5 }
  0x6b   : > { %v1976_v0 = vmov 0.0|0.0   ;;  %vm1977_vm0 = vmmov 0   ;;  %v1978_v1 = vmov 0.0   ;;  %v308_v2 = vld [vmem:[#allocation5] sm:$0xff]  ;;  %v309_v3 = vld [vmem:[#allocation5 + $0x8] sm:$0xff]  ;;  %v310_v4 = vld [vmem:[#allocation5 + $0x10] sm:$0xff] }
  0x6c   : > { %1946 = vsyncadd (%p2397_p8), [#allocation6], 4294966272  ;;  %1671 = vmatprep.subr.bf16.mxu0 %v1976_v0  ;;  %1608 = vmatprep.mubr.msk.f32.mxu0 %vm1977_vm0, %v1978_v1  ;;  %v1672_v5 = vpack.c.bf16 %v309_v3, %v308_v2  ;;  %v311_v6 = vld [vmem:[#allocation5 + $0x18] sm:$0xff]  ;;  %vm319_vm1 = vcmask 261120   ;;  %s1979_s14 = smov 96   ;;  %s1980_s16 = smov 120  }
  0x6d   : > { %1611 = vmatprep.subr.mxu1 %v1978_v1  ;;  %1613 = vmatprep.mubr.msk.f32.mxu1 %vm1977_vm0, %v1978_v1  ;;  %v1675_v7 = vpack.c.bf16 %v311_v6, %v310_v4  ;;  %v307_v8 = vld [vmem:[%s265_s10] sm:$0xf]  ;;  %s1981_s7 = smov 88   ;;  %vm397_vm2 = vcmask 64512   ;;  %vm473_vm3 = vcmask 27648   ;;  %s1982_s17 = smov 56  }
  0x6e   : > { %1673 = vmatpush3.bf16.msra.mxu0 %v1672_v5  ;;  %v1542_v9 = vld [vmem:[%s2380_s2] ss:$0 sm:$0xff]  ;;  %s1983_s19 = smov 64   ;;  %s1984_s12 = smov 80   ;;  %v733_v33 = vld [vmem:[#allocation7 + $0x8] sm:$0xff]  ;;  %vm492_vm4 = vcmask 1043456  }
  0x6f   : > { %1674 = vmatprep.subr.bf16.mxu0 %v1976_v0  ;;  %s1985_s20 = smov 112   ;;  %vm488_vm5 = vcmask 31744   ;;  %v565_v43 = vld [vmem:[#allocation7] sm:$0xff]  ;;  %s1986_s15 = smov 72  }
  0x70   : > { %s1987_s8 = smov 104   ;;  %s1988_s13 = smov 48  }
  0x71   : > { %s1989_s10 = smov 40   ;;  %s306_s27 = scalar_lea.vmem [#allocation9], %s2199_s30 }
  0x72   : > { %1676 = vmatpush3.bf16.msra.mxu0 %v1675_v7  ;;  %v1047_v7 = vld [vmem:[#allocation7 + $0x10] sm:$0xff]  ;;  %s1567_s29 = sshll.u32 %s2048_s25, 6  ;;  %p2398_p0 = scmp.ne.s32.totalorder %s2393_s9, 0 }
  0x73   : > { %1621 = vmatprep.subr.mxu0 %v1978_v1 }
  0x75   : > { %1609 = vmatmul.mubr.msk.f32.vlgmr.msra.gmra.mrb[0].mxu0 %vm319_vm1, %v307_v8 }
  0x76   : > { %1623 = vmatprep.mubr.msk.f32.mxu0 %vm1977_vm0, %v1978_v1 }
 0x148   : > { %v389_v10 = vpop.f32.mrb[0].mxu0 }
 0x149   : > { %v2222_v11 = vadd.f32 %v1542_v9, %v389_v10  ;;  %v1610_v12 = vpop.f32.mrb[1].mxu0 }
 0x14b   : > { %395 = vrot.lane.b32.xlu0 %v2222_v11, %s1979_s14  ;;  %v2226_v13 = vmul.f32 0.35355338, %v2222_v11 }
 0x14d   : > { %566 = vrot.lane.b32.xlu1 %v2226_v13, %s1980_s16 }
 0x14f   : > { %568 = vrot.lane.b32.xlu0 %v2222_v11, %s1981_s7  ;;  %s2305_s7 = scalar_lea.hbm %s2384_s6, %s1567_s29 }
 0x1bd   : > { %v396_v14 = vpop.permute.xlu0 %395 }
 0x1be   : > { %1612 = vmatpush3.xpose.msk.msra.mxu1 %vm397_vm2, %v396_v14 }
 0x1bf   : > { %1616 = vmatprep.subr.mxu1 %v1978_v1  ;;  %v567_v16 = vpop.permute.xlu1 %566 }
 0x1c1   : > { %v569_v15 = vpop.permute.xlu0 %568  ;;  %1614 = vmatmul.mubr.msk.f32.vlgmr.msra.gmra.mrb[0].mxu1 %vm397_vm2, %v2226_v13 }
 0x1c2   : > { %1622 = vmatpush3.xpose.msk.msra.mxu0 %vm397_vm2, %v569_v15  ;;  %1618 = vmatprep.mubr.msk.f32.mxu1 %vm1977_vm0, %v1978_v1 }
 0x1c3   : > { %1631 = vmatprep.subr.mxu0 %v1978_v1 }
 0x1c5   : > { %1624 = vmatmul.mubr.msk.f32.vlgmr.msra.gmra.mrb[2].mxu0 %vm397_vm2, %v567_v16 }
 0x1c6   : > { %1633 = vmatprep.mubr.msk.f32.mxu0 %vm1977_vm0, %v1978_v1  ;;  %1632 = vmatpush3.msra.mxu0 %v733_v33 }
 0x1c7   : > { %1641 = vmatprep.subr.mxu0 %v1978_v1 }
 0x294   : > { %v469_v17 = vpop.f32.mrb[0].mxu1 }
 0x295   : > { %v1615_v18 = vpop.f32.mrb[1].mxu1  ;;  %v474_v19 = vsel %vm473_vm3, %v469_v17, -inf }
 0x296   : > { %475 = vmax.xlane.f32.xlu1 %v474_v19 }
 0x298   : > { %v640_v20 = vpop.f32.mrb[2].mxu0 }
 0x299   : > { %v1625_v21 = vpop.f32.mrb[3].mxu0  ;;  %v644_v22 = vsel %vm473_vm3, %v640_v20, -inf }
 0x29a   : > { %645 = vmax.xlane.f32.xlu0 %v644_v22 }
 0x323   : > { %v476_v23 = vpop.xlane.xlu1 %475 }
 0x324   : > { %v477_v24 = vsub.f32 %v469_v17, %v476_v23 }
 0x326   : > { %v478_v25 = vmul.f32 1.442695, %v477_v24 }
 0x327   : > { %v646_v26 = vpop.xlane.xlu0 %645 }
 0x328   : > { %1765 = vpow2.f32 %v478_v25  ;;  %v647_v27 = vsub.f32 %v640_v20, %v646_v26 }
 0x32a   : > { %v648_v28 = vmul.f32 1.442695, %v647_v27 }
 0x32c   : > { %1767 = vpow2.f32 %v648_v28 }
 0x332   : > { %v1766_v29 = vpop.eup %1765 }
 0x333   : > { %v480_v30 = vsel %vm473_vm3, %v1766_v29, 0.0 }
 0x334   : > { %481 = vadd.xlane.f32.xlu0 %v480_v30 }
 0x336   : > { %v1768_v31 = vpop.eup %1767 }
 0x337   : > { %v650_v32 = vsel %vm473_vm3, %v1768_v31, 0.0 }
 0x338   : > { %651 = vadd.xlane.f32.xlu1 %v650_v32 }
 0x349   : > { %656 = vrot.lane.b32.xlu1 %v2222_v11, %s1982_s17  ;;  %s1408_s17 = sshll.u32 %s306_s27, 4  ;;  %s1409_s17 = int_to_ptr.vmem [resolvable:$true] %s1408_s17 }
 0x34a   : > { %486 = vrot.lane.b32.xlu0 %v2222_v11, %s1983_s19  ;;  %s1382_s19 = scalar_lea.sflag [#allocation10], %s2196_s18 }
 0x34d   : > { %882 = vrot.lane.b32.xlu1 %v2222_v11, %s1984_s12  ;;  %s1867_s12 = scalar_lea.vmem %s1409_s17, 64 }
 0x34e   : > { %880 = vrot.lane.b32.xlu0 %v2226_v13, %s1985_s20  ;;  %p1868_p11 = scmp.ne.s32.totalorder %s1409_s17, %s1867_s12  ;;  %s1990_s20 = smov [#allocation9]  }
 0x350   : > { %p1869_p1 = pnand %p1868_p11, %p2398_p0 }
 0x352   : > { %p1870_p3 = pneg %p1869_p1 }
 0x3c1   : > { %v482_v34 = vpop.xlane.xlu0 %481 }
 0x3c2   : > { %1769 = vrcp.f32 %v482_v34 }
 0x3c5   : > { %v652_v35 = vpop.xlane.xlu1 %651  ;;  %v487_v36 = vpop.permute.xlu0 %486 }
 0x3c6   : > { %1771 = vrcp.f32 %v652_v35  ;;  %1617 = vmatpush3.msk.msra.mxu1 %vm492_vm4, %v487_v36 }
 0x3c7   : > { %1626 = vmatprep.subr.mxu1 %v1978_v1 }
 0x3c9   : > { %v657_v39 = vpop.permute.xlu1 %656  ;;  %v881_v49 = vpop.permute.xlu0 %880 }
 0x3cc   : > { %v1770_v37 = vpop.eup %1769 }
 0x3cd   : > { %v484_v38 = vmul.f32 %v1770_v37, %v1766_v29  ;;  %v883_v47 = vpop.permute.xlu1 %882 }
 0x3cf   : > { %1619 = vmatmul.mubr.msk.f32.vlgmr.msra.gmra.mrb[2].mxu1 %vm488_vm5, %v484_v38 }
 0x3d0   : > { %v1772_v40 = vpop.eup %1771  ;;  %1627 = vmatpush3.msk.msra.mxu1 %vm492_vm4, %v657_v39  ;;  %1628 = vmatprep.mubr.msk.f32.mxu1 %vm1977_vm0, %v1978_v1 }
 0x3d1   : > { %v654_v41 = vmul.f32 %v1772_v40, %v1768_v31  ;;  %1636 = vmatprep.subr.mxu1 %v1978_v1 }
 0x3d3   : > { %v655_v42 = vadd.f32 %v654_v41, %v484_v38  ;;  %1629 = vmatmul.mubr.msk.f32.vlgmr.msra.gmra.mrb[4].mxu1 %vm488_vm5, %v654_v41 }
 0x3d4   : > { %1638 = vmatprep.mubr.msk.f32.mxu1 %vm1977_vm0, %v1978_v1  ;;  %1637 = vmatpush3.msra.mxu1 %v565_v43 }
 0x3d5   : > { %1646 = vmatprep.subr.mxu1 %v1978_v1 }
 0x4a2   : > { %v561_v44 = vpop.f32.mrb[2].mxu1 }
 0x4a3   : > { %v1620_v45 = vpop.f32.mrb[3].mxu1  ;;  %1639 = vmatmul.mubr.msk.f32.vlgmr.msra.gmra.mrb[6].mxu1 %vm397_vm2, %v561_v44 }
 0x4a4   : > { %1648 = vmatprep.mubr.msk.f32.mxu1 %vm1977_vm0, %v1978_v1 }
 0x4a6   : > { %v729_v46 = vpop.f32.mrb[4].mxu1 }
 0x4a7   : > { %v1630_v48 = vpop.f32.mrb[5].mxu1  ;;  %1634 = vmatmul.mubr.msk.f32.vlgmr.msra.gmra.mrb[4].mxu0 %vm397_vm2, %v729_v46 }
 0x4a8   : > { %1642 = vmatpush3.xpose.msk.msra.mxu0 %vm397_vm2, %v883_v47  ;;  %1643 = vmatprep.mubr.msk.f32.mxu0 %vm1977_vm0, %v1978_v1 }
 0x4a9   : > { %1651 = vmatprep.subr.mxu0 %v1978_v1 }
 0x4ab   : > { %1644 = vmatmul.mubr.msk.f32.vlgmr.msra.gmra.mrb[6].mxu0 %vm397_vm2, %v881_v49 }
 0x4ac   : > { %1653 = vmatprep.mubr.msk.f32.mxu0 %vm1977_vm0, %v1978_v1  ;;  %1652 = vmatpush3.msra.mxu0 %v1047_v7 }
 0x4ad   : > { %1661 = vmatprep.subr.mxu0 %v1978_v1 }
 0x576   : > { %v876_v50 = vpop.f32.mrb[6].mxu1 }
 0x577   : > { %v1640_v51 = vpop.f32.mrb[7].mxu1 }
 0x57a   : > { %v803_v52 = vpop.f32.mrb[4].mxu0 }
 0x57b   : > { %v877_v53 = vadd.f32 %v876_v50, %v803_v52  ;;  %v1635_v54 = vpop.f32.mrb[5].mxu0 }
 0x57e   : > { %v954_v55 = vpop.f32.mrb[6].mxu0 }
 0x57f   : > { %v1645_v56 = vpop.f32.mrb[7].mxu0  ;;  %v958_v57 = vsel %vm473_vm3, %v954_v55, -inf }
 0x580   : > { %959 = vmax.xlane.f32.xlu1 %v958_v57 }
 0x591   : > { %1124 = vrot.lane.b32.xlu1 %v2222_v11, %s1986_s15  ;;  %s1871_s15 = sshll.u32 %s1990_s20, 4  ;;  %s1872_s15 = int_to_ptr.vmem [resolvable:$false] %s1871_s15 }
 0x592   : > { %p1874_p7 = scmp.lt.s32.totalorder %s1409_s17, %s1872_s15 }
 0x595   : > { %1122 = vrot.lane.b32.xlu1 %v2226_v13, %s1987_s8  ;;  %s1873_s8 = scalar_lea.vmem %s1872_s15, 128 }
 0x596   : > { %p1875_p9 = scmp.lt.s32.totalorder %s1873_s8, %s1867_s12 }
 0x598   : > { %p1876_p12 = por %p1875_p9, %p1874_p7 }
 0x59a   : > { %p1877_p2 = pnand %p1876_p12, %p1870_p3 }
 0x60d   : > { %v960_v58 = vpop.xlane.xlu1 %959 }
 0x60e   : > { %v961_v59 = vsub.f32 %v954_v55, %v960_v58 }
 0x610   : > { %v962_v60 = vmul.f32 1.442695, %v961_v59 }
 0x611   : > { %v1125_v3 = vpop.permute.xlu1 %1124 }
 0x612   : > { %1773 = vpow2.f32 %v962_v60 }
 0x615   : > { %v1123_v6 = vpop.permute.xlu1 %1122 }
 0x61c   : > { %v1774_v61 = vpop.eup %1773 }
 0x61d   : > { %v964_v62 = vsel %vm473_vm3, %v1774_v61, 0.0 }
 0x61e   : > { %965 = vadd.xlane.f32.xlu0 %v964_v62 }
 0x634   : > { %970 = vrot.lane.b32.xlu0 %v2222_v11, %s1988_s13 }
 0x6ab   : > { %v966_v63 = vpop.xlane.xlu0 %965 }
 0x6ac   : > { %1775 = vrcp.f32 %v966_v63 }
 0x6af   : > { %v971_v0 = vpop.permute.xlu0 %970 }
 0x6b0   : > { %1647 = vmatpush3.msk.msra.mxu1 %vm492_vm4, %v971_v0 }
 0x6b1   : > { %1656 = vmatprep.subr.mxu1 %v1978_v1 }
 0x6b6   : > { %v1776_v2 = vpop.eup %1775 }
 0x6b7   : > { %v968_v4 = vmul.f32 %v1776_v2, %v1774_v61 }
 0x6b9   : > { %v969_v5 = vadd.f32 %v968_v4, %v655_v42  ;;  %1649 = vmatmul.mubr.msk.f32.vlgmr.msra.gmra.mrb[8].mxu1 %vm488_vm5, %v968_v4 }
 0x6ba   : > { %1657 = vmatpush3.xpose.msk.msra.mxu1 %vm397_vm2, %v1125_v3  ;;  %1658 = vmatprep.mubr.msk.f32.mxu1 %vm1977_vm0, %v1978_v1 }
 0x6bb   : > { %1666 = vmatprep.subr.mxu1 %v1978_v1 }
 0x6bd   : > { %1659 = vmatmul.mubr.msk.f32.vlgmr.msra.gmra.mrb[10].mxu1 %vm397_vm2, %v1123_v6 }
 0x6be   : > { %1668 = vmatprep.mubr.msk.f32.mxu1 %vm1977_vm0, %v1978_v1 }
 0x78c   : > { %v1043_v8 = vpop.f32.mrb[8].mxu1 }
 0x78d   : > { %v1650_v9 = vpop.f32.mrb[9].mxu1  ;;  %1654 = vmatmul.mubr.msk.f32.vlgmr.msra.gmra.mrb[8].mxu0 %vm397_vm2, %v1043_v8 }
 0x78e   : > { %1663 = vmatprep.mubr.msk.f32.mxu0 %vm1977_vm0, %v1978_v1  ;;  %v1289_v1 = vld [vmem:[#allocation7 + $0x18] sm:$0xff] }
 0x78f   : > { %1667 = vmatpush3.msra.mxu1 %v1289_v1 }
 0x790   : > { %v1196_v10 = vpop.f32.mrb[10].mxu1 }
 0x791   : > { %v1660_v12 = vpop.f32.mrb[11].mxu1  ;;  %v1200_v13 = vsel %vm473_vm3, %v1196_v10, -inf }
 0x792   : > { %1201 = vmax.xlane.f32.xlu0 %v1200_v13 }
 0x7a8   : > { %1212 = vrot.lane.b32.xlu0 %v2222_v11, %s1989_s10 }
 0x81f   : > { %v1202_v14 = vpop.xlane.xlu0 %1201 }
 0x820   : > { %v1203_v15 = vsub.f32 %v1196_v10, %v1202_v14 }
 0x822   : > { %v1204_v16 = vmul.f32 1.442695, %v1203_v15 }
 0x823   : > { %v1213_v17 = vpop.permute.xlu0 %1212 }
 0x824   : > { %1777 = vpow2.f32 %v1204_v16  ;;  %1662 = vmatpush3.msk.msra.mxu0 %vm492_vm4, %v1213_v17 }
 0x82e   : > { %v1778_v18 = vpop.eup %1777 }
 0x82f   : > { %v1206_v19 = vsel %vm473_vm3, %v1778_v18, 0.0 }
 0x830   : > { %1207 = vadd.xlane.f32.xlu1 %v1206_v19 }
 0x860   : > { %v1117_v20 = vpop.f32.mrb[8].mxu0 }
 0x861   : > { %v1121_v21 = vadd.f32 %v1117_v20, %v877_v53  ;;  %v1655_v22 = vpop.f32.mrb[9].mxu0 }
 0x8bd   : > { %v1208_v11 = vpop.xlane.xlu1 %1207 }
 0x8be   : > { %1779 = vrcp.f32 %v1208_v11 }
 0x8c8   : > { %v1780_v23 = vpop.eup %1779 }
 0x8c9   : > { %v1210_v24 = vmul.f32 %v1780_v23, %v1778_v18 }
 0x8cb   : > { %v1211_v25 = vadd.f32 %v1210_v24, %v969_v5  ;;  %1664 = vmatmul.mubr.msk.f32.vlgmr.msra.gmra.mrb[10].mxu0 %vm488_vm5, %v1210_v24 }
 0x8cd   : > { %v1374_v26 = vmul.f32 0.25, %v1211_v25 }
 0x8cf   : > { %1375 = vst.msk [vmem:[%s306_s27] sm:$0xf] %vm473_vm3, %v1374_v26 }
 0x99e   : > { %v1285_v27 = vpop.f32.mrb[10].mxu0 }
 0x99f   : > { %v1665_v28 = vpop.f32.mrb[11].mxu0  ;;  %1669 = vmatmul.mubr.msk.f32.vlgmr.msra.gmra.mrb[12].mxu1 %vm397_vm2, %v1285_v27 }
 0x9a0   : > { %1880 = shalt.err (!%p1877_p2)
}
 0x9a1   : > { %s1881_s13 = scalar_lea.hbm %s2305_s7, 64  ;;  %s1885_s14 = scalar_lea.hbm %s2384_s6, 128 }
 0x9a2   : > { %p1882_p13 = scmp.ne.s32.totalorder %s2305_s7, %s1881_s13  ;;  %p1886_p4 = scmp.lt.u32.totalorder %s2305_s7, %s2384_s6 }
 0x9a3   : > { %p1887_p5 = scmp.lt.u32.totalorder %s1885_s14, %s1881_s13  ;;  %p1889_p11 = scmp.lt.u32.totalorder %s1881_s13, %s2305_s7 }
 0x9a4   : > { %p1883_p6 = pnand %p1882_p13, %p2398_p0 }
 0x9a5   : > { %p1888_p8 = por %p1887_p5, %p1886_p4 }
 0x9a6   : > { %p1884_p10 = pneg %p1883_p6 }
 0x9a7   : > { %p1890_p1 = por %p1889_p11, %p1888_p8 }
 0x9a9   : > { %p1891_p3 = pnand %p1890_p1, %p1884_p10 }
 0x9ab   : > { %1894 = shalt.err (!%p1891_p3)
}
 0x9ac   : > { %1688 = dma.vmem_to_hbm [thread:$0]  (%p2398_p0), %s1409_s17, 64, %s2305_s7, %s1382_s19   ;;  %v1564_v30 = vld [vmem:[%s2382_s4] ss:$0 sm:$0xff]  ;;  %vm1372_vm6 = vcmask 257024  }
 0x9ad   : > { %s299_s8 = scalar_lea.vmem [#allocation8], %s2199_s30  ;;  %s2334_s14 = scalar_lea.hbm %s2383_s5, %s1567_s29 }
 0x9ae   : > { %s1395_s10 = sshll.u32 %s299_s8, 4  ;;  %s1377_s7 = scalar_lea.sflag [#allocation4], %s2196_s18  ;;  %s2336_s10 = int_to_ptr.vmem [resolvable:$true] %s1395_s10 }
 0x9af   : > { %s1895_s17 = scalar_lea.vmem %s2336_s10, 64  ;;  %s1991_s30 = smov [#allocation8]  }
 0x9b0   : > { %p1896_p7 = scmp.ne.s32.totalorder %s2336_s10, %s1895_s17  ;;  %s1899_s19 = sshll.u32 %s1991_s30, 4  ;;  %s1900_s19 = int_to_ptr.vmem [resolvable:$false] %s1899_s19 }
 0x9b1   : > { %s1901_s25 = scalar_lea.vmem %s1900_s19, 128  ;;  %p1902_p2 = scmp.lt.s32.totalorder %s2336_s10, %s1900_s19 }
 0x9b2   : > { %p1897_p9 = pnand %p1896_p7, %p2398_p0  ;;  %p1903_p13 = scmp.lt.s32.totalorder %s1901_s25, %s1895_s17 }
 0x9b4   : > { %p1898_p12 = pneg %p1897_p9  ;;  %p1904_p6 = por %p1903_p13, %p1902_p2 }
 0x9b6   : > { %p1905_p10 = pnand %p1904_p6, %p1898_p12 }
 0xa72   : > { %v1359_v29 = vpop.f32.mrb[12].mxu1 }
 0xa73   : > { %v1363_v31 = vadd.f32 %v1359_v29, %v1121_v21  ;;  %v1670_v32 = vpop.f32.mrb[13].mxu1 }
 0xa75   : > { %v1371_v33 = vadd.f32 %v1564_v30, %v1363_v31 }
 0xa77   : > { %1373 = vst.msk [vmem:[%s299_s8] sm:$0xf] %vm1372_vm6, %v1371_v33 }
 0xa78   : > { %1908 = shalt.err (!%p1905_p10)
}
 0xa79   : > { %s1909_s18 = scalar_lea.hbm %s2334_s14, 64  ;;  %s1913_s20 = scalar_lea.hbm %s2383_s5, 128 }
 0xa7a   : > { %p1910_p4 = scmp.ne.s32.totalorder %s2334_s14, %s1909_s18  ;;  %p1914_p11 = scmp.lt.u32.totalorder %s2334_s14, %s2383_s5 }
 0xa7b   : > { %p1915_p1 = scmp.lt.u32.totalorder %s1913_s20, %s1909_s18  ;;  %p1917_p7 = scmp.lt.u32.totalorder %s1909_s18, %s2334_s14 }
 0xa7c   : > { %p1911_p5 = pnand %p1910_p4, %p2398_p0 }
 0xa7d   : > { %p1916_p3 = por %p1915_p1, %p1914_p11 }
 0xa7e   : > { %p1912_p8 = pneg %p1911_p5 }
 0xa7f   : > { %p1918_p9 = por %p1917_p7, %p1916_p3 }
 0xa81   : > { %p1919_p12 = pnand %p1918_p9, %p1912_p8 }
 0xa83   : > { %1922 = shalt.err (!%p1919_p12)
}
 0xa84   : > { %1687 = dma.vmem_to_hbm [thread:$0]  (%p2398_p0), %s2336_s10, 64, %s2334_s14, %s1377_s7  }
 0xa85 PF: > { %s1420_s8 = sand.u32 1, %s1957_s21   ;;  %p2399_p2 = scmp.ne.s32.totalorder %s2389_s28, 0 }
 0xa86   : > { %p2400_p13 = scmp.ge.s32.totalorder %s1969_s24, 2  ;;  %s1421_s13 = scalar_lea.sflag [#allocation4], %s1420_s8 }
 0xa88   : > { %p1703_p6 = pnand %p2400_p13, %p2399_p2 }
 0xa8a   : > { %1948 = dma.done.wait (!%p1703_p6), %s1421_s13, 64  }
 0xa8b   : > { %1950 = vsyncadd (!%p1703_p6), %s1421_s13, 4294967232  ;;  %s1430_s27 = scalar_lea.sflag [#allocation10], %s1420_s8 }
 0xa8c   : > { %1952 = dma.done.wait (!%p1703_p6), %s1430_s27, 64  }
 0xa8d   : > { %1954 = vsyncadd (!%p1703_p6), %s1430_s27, 4294967232  ;;  %p24_p0 = scmp.ge.s32.totalorder %s2137_s26, 4   ;;  %s2401_s21 = smov %s1961_s22 }
 0xa8e   : > { %s2402_s22 = smov %s1965_s23  ;;  %s2403_s23 = smov %s2153_s11 }
 0xa8f   : > { %s2404_s24 = smov %s2137_s26  ;;  %26 = sbr.rel (!%p24_p0) target bundleno = 8 (0x8), region = 110 }
 0xa96   :  { %1435 = vsyncpa [#allocation3], 1 }
 0xa97   :  { %1437 = vsyncpa [#allocation3 + $0x1], 1 }
 0xa98   :  { %1438 = vsyncpa [#allocation6], 1 }
 0xa99   :  { %1439 = vsyncpa [#allocation4], 1 }
 0xa9a   :  { %1441 = vsyncpa [#allocation4 + $0x1], 1 }
 0xa9b   :  { %1442 = vsyncpa [#allocation10], 1 }
 0xa9c   :  { %1444 = vsyncpa [#allocation10 + $0x1], 1 }

</bundles_post_ra>
